<compile_context>
chip_gen: v7x
topology: tpu7x:2x2x1
jax: 0.10.0
libtpu: 0.0.40
codegen_flags: <defaults>
</compile_context>

<pallas_src>
import jax
import jax.numpy as jnp
import numpy as np
from jax.experimental import pallas as pl
from jax.experimental.pallas import tpu as pltpu


def _round_up(a, b):
    return ((a + b - 1) // b) * b


def _cdiv(a, b):
    return -(-a // b)


def _conv_out_lens(win_sizes, W, padding):
    Wp = W + 2 * padding
    return [Wp - k + 1 for k in win_sizes]


def _prepare_params(params, win_sizes, *, W, padding, vocab_p):
    """Host-side parameter re-layout (tiny tensors, done once)."""
    emb = params['emb']                                  # (vocab, E)
    vocab, E = emb.shape
    H = params['lb'].shape[0]
    nk = len(win_sizes)
    Ls = _conv_out_lens(win_sizes, W, padding)
    tot = sum(Ls) * H

    # Block-diagonal embedding table: (W*vocab_p, W*E).  Row block w holds the
    # embedding table for word position w; rows [vocab, vocab_p) stay zero.
    w_emb = jnp.zeros((W * vocab_p, W * E), jnp.float32)
    for w in range(W):
        w_emb = w_emb.at[w * vocab_p:w * vocab_p + vocab,
                         w * E:(w + 1) * E].set(emb)

    # Block-banded conv weight: (W*E, tot).  Column block (k, l) holds the
    # taps of conv k contributing to output position l; zero-padding positions
    # are simply omitted from the band.
    w_conv = jnp.zeros((W * E, tot), jnp.float32)
    bias_row = jnp.zeros((tot,), jnp.float32)
    off = 0
    for i, k in enumerate(win_sizes):
        wk = params['conv_w'][i]                         # (H, E, k)
        bk = params['conv_b'][i]                         # (H,)
        L = Ls[i]
        for l in range(L):
            for t in range(k):
                pos = l + t - padding                    # padded word position
                if 0 <= pos < W:
                    w_conv = w_conv.at[pos * E:(pos + 1) * E,
                                       off + l * H:off + (l + 1) * H].set(
                                           wk[:, :, t].T)
            bias_row = bias_row.at[off + l * H:off + (l + 1) * H].set(bk)
        off += L * H

    w_lin = params['lw'].T                               # (nk*H, H)
    biases = jnp.concatenate([bias_row, params['lb']]).reshape(1, tot + H)

    return (w_emb.astype(jnp.bfloat16),
            w_conv.astype(jnp.bfloat16),
            w_lin.astype(jnp.bfloat16),
            biases.astype(jnp.float32),
            Ls, tot)


def _make_char_encoder_kernel(win_sizes, *, H, W, E, vocab_p, padding):
    Ls = _conv_out_lens(win_sizes, W, padding)
    tot = sum(Ls) * H

    def kernel(chars_ref, w_emb_ref, w_conv_ref, w_lin_ref, b_ref, out_ref):
        chars = chars_ref[...]                           # (tn, W) int32
        tn = chars.shape[0]

        # ---- lane-major one-hot: word position w -> lanes [w*vocab_p, ...) ----
        # Each piece is a full 128-lane-aligned block, so the lane concat is
        # pure layout (no intra-vreg shifting).  bf16 zeros/ones are exact.
        iota_v = jax.lax.broadcasted_iota(jnp.int32, (tn, vocab_p), 1)
        onehot = jnp.concatenate(
            [(chars[:, w:w + 1] == iota_v).astype(jnp.bfloat16)
             for w in range(W)],
            axis=-1)                                     # (tn, W*vocab_p) bf16

        # ---- fused embedding gather: ONE matmul vs the block-diag table ----
        slab = jnp.dot(onehot, w_emb_ref[...],
                       preferred_element_type=jnp.float32)   # (tn, W*E) f32
        # Each slab element is a single bf16 table entry -> cast is lossless.
        slab = slab.astype(jnp.bfloat16)

        # ---- all convolutions, all output positions: ONE banded matmul ----
        pre = jnp.dot(slab, w_conv_ref[...],
                      preferred_element_type=jnp.float32)    # (tn, tot) f32
        pre = jnp.maximum(pre + b_ref[:, :tot], 0.0)         # bias + ReLU

        # ---- per-window pooling over the L_k lane blocks (tree reduction) ----
        pooled = []
        off = 0
        for i, _k in enumerate(win_sizes):
            L = Ls[i]
            blocks = [pre[:, off + l * H:off + (l + 1) * H] for l in range(L)]
            op = jnp.maximum if i == 0 else (lambda a, b: a + b)
            while len(blocks) > 1:
                nxt = [op(blocks[j], blocks[j + 1])
                       for j in range(0, len(blocks) - 1, 2)]
                if len(blocks) % 2:
                    nxt.append(blocks[-1])
                blocks = nxt
            p = blocks[0]
            if i != 0:
                p = p * (1.0 / L)                        # mean pool
            pooled.append(p)                             # (tn, H)
            off += L * H

        feat = jnp.concatenate(pooled, axis=-1).astype(jnp.bfloat16)  # (tn, nk*H)
        out = jnp.dot(feat, w_lin_ref[...],
                      preferred_element_type=jnp.float32) + b_ref[:, tot:]
        out_ref[...] = out.astype(out_ref.dtype)

    return kernel


def char_encoder_forward(chars, params, *, win_sizes, padding=1, tn=1024):
    """chars: (B, S, W) int32 char ids. Returns (B, S, H) float32."""
    B, S, W = chars.shape
    vocab, E = params['emb'].shape
    H = params['lb'].shape[0]
    nk = len(win_sizes)
    N = B * S

    # 128-lane-aligned vocab blocks for the lane-major one-hot.
    vocab_p = _round_up(vocab, 128)

    w_emb, w_conv, w_lin, biases, Ls, tot = _prepare_params(
        params, win_sizes, W=W, padding=padding, vocab_p=vocab_p)

    # ---- token tiling: large tiles, but keep the parallel grid axis even ----
    # (>= 2) whenever there is enough work so v7x's two TensorCores both get
    # tiles; tiles are balanced across the grid.
    N8 = _round_up(N, 8)
    tn_req = max(8, min(_round_up(int(tn), 8), N8))
    n_tiles = _cdiv(N8, tn_req)
    if N8 >= 16:
        if n_tiles == 1:
            n_tiles = 2
        elif n_tiles % 2 == 1:
            n_tiles += 1
    tn_eff = _round_up(_cdiv(N8, n_tiles), 8)
    N_pad = n_tiles * tn_eff

    chars_flat = chars.reshape(N, W).astype(jnp.int32)
    if N_pad != N:
        chars_flat = jnp.pad(chars_flat, ((0, N_pad - N), (0, 0)))

    kernel = _make_char_encoder_kernel(
        tuple(int(k) for k in win_sizes),
        H=H, W=W, E=E, vocab_p=vocab_p, padding=padding)

    # VMEM estimate: dominant transients are the bf16 one-hot (tn, W*vocab_p)
    # and the f32 pre-activation (tn, tot); weights are VMEM-resident.
    per_row = W * vocab_p * 2 + W * E * (4 + 2) + tot * 4 + (nk * H) * 6 + H * 4
    weights_b = (W * vocab_p * W * E + W * E * tot + nk * H * H) * 2 + (tot + H) * 4
    io_b = 2 * tn_eff * (W * 4 + H * 4)                  # double-buffered chars/out
    est = tn_eff * per_row + weights_b + io_b
    vmem_limit = int(min(64 << 20, max(32 << 20, 3 * est)))

    out = pl.pallas_call(
        kernel,
        out_shape=jax.ShapeDtypeStruct((N_pad, H), jnp.float32),
        grid_spec=pl.GridSpec(
            grid=(n_tiles,),
            in_specs=[
                pl.BlockSpec((tn_eff, W), lambda i: (i, 0)),
                pl.BlockSpec((W * vocab_p, W * E), lambda i: (0, 0)),
                pl.BlockSpec((W * E, tot), lambda i: (0, 0)),
                pl.BlockSpec((nk * H, H), lambda i: (0, 0)),
                pl.BlockSpec((1, tot + H), lambda i: (0, 0)),
            ],
            out_specs=pl.BlockSpec((tn_eff, H), lambda i: (i, 0)),
        ),
        compiler_params=pltpu.CompilerParams(
            dimension_semantics=("parallel",),
            vmem_limit_bytes=vmem_limit),
    )(chars_flat, w_emb, w_conv, w_lin, biases)

    return out[:N].reshape(B, S, H)


def reference_forward(chars, params, *, win_sizes, padding=1):
    """Pure-JAX f32 reference mirroring the PyTorch module (eval mode)."""
    B, S, W = chars.shape
    H = params['lb'].shape[0]
    emb = params['emb'][chars.reshape(-1, W)]                  # (N, W, E)
    x = jnp.transpose(emb, (0, 2, 1))                          # (N, E, W) == NCW
    outs = []
    for i, k in enumerate(win_sizes):
        w = params['conv_w'][i]                                # (H, E, k)
        b = params['conv_b'][i]
        y = jax.lax.conv_general_dilated(
            x, w, window_strides=(1,), padding=[(padding, padding)],
            dimension_numbers=('NCH', 'OIH', 'NCH'))
        y = y + b[None, :, None]
        y = jnp.maximum(y, 0.0)
        if i == 0:
            p = jnp.max(y, axis=2)
        else:
            p = jnp.mean(y, axis=2)
        outs.append(p)
    feat = jnp.concatenate(outs, axis=1)                       # (N, nk*H)
    out = feat @ params['lw'].T + params['lb']
    return out.reshape(B, S, H)


if __name__ == "__main__":
    # Small config consistent with the module.
    B, S, W = 2, 8, 8          # batch, max_seq_len, max_wd_len
    vocab, E = 50, 16          # char vocab, char_embedding_size
    H = 32                     # char_hidden_size
    win_sizes = [2, 3, 4]      # config.char_window_size = "2 3 4"

    key = jax.random.PRNGKey(0)
    keys = jax.random.split(key, 5 + 2 * len(win_sizes))

    params = {
        'emb': jax.random.normal(keys[0], (vocab, E), jnp.float32) * 0.5,
        'conv_w': [jax.random.normal(keys[1 + i], (H, E, k), jnp.float32) * 0.1
                   for i, k in enumerate(win_sizes)],
        'conv_b': [jax.random.normal(keys[1 + len(win_sizes) + i], (H,),
                                     jnp.float32) * 0.1
                   for i in range(len(win_sizes))],
        'lw': jax.random.normal(keys[-3], (H, len(win_sizes) * H),
                                jnp.float32) * 0.1,
        'lb': jax.random.normal(keys[-2], (H,), jnp.float32) * 0.1,
    }

    chars = jax.random.randint(keys[-1], (B, S, W), 0, vocab, dtype=jnp.int32)

    # Tolerance covers bf16 MXU operands (f32 accumulation) vs. the exact f32
    # gather/conv reference; structural errors would be orders of magnitude
    # larger.
    RTOL = ATOL = 1e-2

    # Case 1: small run (even 2-step grid).
    out = char_encoder_forward(chars, params, win_sizes=win_sizes)
    out = jax.block_until_ready(out)
    ref = jax.block_until_ready(
        reference_forward(chars, params, win_sizes=win_sizes))
    assert out.shape == (B, S, H), out.shape
    np.testing.assert_allclose(np.asarray(out), np.asarray(ref),
                               rtol=RTOL, atol=ATOL)

    # Case 2: multi-tile grid with a ragged token count (exercises the
    # pad-to-tile + slice-back path and the tile-balancing logic).
    B2, S2 = 3, 50
    chars2 = jax.random.randint(jax.random.fold_in(key, 7), (B2, S2, W), 0,
                                vocab, dtype=jnp.int32)
    out2 = jax.block_until_ready(
        char_encoder_forward(chars2, params, win_sizes=win_sizes, tn=128))
    ref2 = jax.block_until_ready(
        reference_forward(chars2, params, win_sizes=win_sizes))
    assert out2.shape == (B2, S2, H), out2.shape
    np.testing.assert_allclose(np.asarray(out2), np.asarray(ref2),
                               rtol=RTOL, atol=ATOL)

    print("KERNEL_OK")
</pallas_src>

<mosaic_0001>
module attributes {stable_mosaic.version = 11 : i64} {
  func.func @kernel(%arg0: i32, %arg1: memref<8x8xi32, #tpu.memory_space<vmem>>, %arg2: memref<1024x128xbf16, #tpu.memory_space<vmem>>, %arg3: memref<128x768xbf16, #tpu.memory_space<vmem>>, %arg4: memref<96x32xbf16, #tpu.memory_space<vmem>>, %arg5: memref<1x800xf32, #tpu.memory_space<vmem>>, %arg6: memref<8x32xf32, #tpu.memory_space<vmem>>) attributes {dimension_semantics = [#tpu.dimension_semantics<parallel>], iteration_bounds = array<i64: 2>, scalar_prefetch = 0 : i64, scratch_operands = 0 : i64, tpu.core_type = #tpu.core_type<tc>, window_params = [{transform_indices = @transform_0, window_bounds = array<i64: 8, 8>}, {pipeline_mode = #tpu.pipeline_mode<synchronous>, transform_indices = @transform_1, window_bounds = array<i64: 1024, 128>}, {pipeline_mode = #tpu.pipeline_mode<synchronous>, transform_indices = @transform_2, window_bounds = array<i64: 128, 768>}, {pipeline_mode = #tpu.pipeline_mode<synchronous>, transform_indices = @transform_3, window_bounds = array<i64: 96, 32>}, {pipeline_mode = #tpu.pipeline_mode<synchronous>, transform_indices = @transform_4, window_bounds = array<i64: 1, 800>}, {transform_indices = @transform_5, window_bounds = array<i64: 8, 32>}]} {
    %c0 = arith.constant 0 : index
    %c0_0 = arith.constant 0 : index
    %0 = vector.load %arg1[%c0, %c0_0] : memref<8x8xi32, #tpu.memory_space<vmem>>, vector<8x8xi32>
    %1 = tpu.iota {dimensions = array<i32: 1>} : vector<8x128xi32>
    %2 = vector.extract_strided_slice %0 {offsets = [0, 0], sizes = [8, 1], strides = [1, 1]} : vector<8x8xi32> to vector<8x1xi32>
    %3 = vector.broadcast %2 : vector<8x1xi32> to vector<8x128xi32>
    %4 = arith.cmpi eq, %3, %1 : vector<8x128xi32>
    %5 = arith.extui %4 : vector<8x128xi1> to vector<8x128xi32>
    %6 = arith.sitofp %5 : vector<8x128xi32> to vector<8x128xf32>
    %7 = arith.truncf %6 : vector<8x128xf32> to vector<8x128xbf16>
    %8 = vector.extract_strided_slice %0 {offsets = [0, 1], sizes = [8, 1], strides = [1, 1]} : vector<8x8xi32> to vector<8x1xi32>
    %9 = vector.broadcast %8 : vector<8x1xi32> to vector<8x128xi32>
    %10 = arith.cmpi eq, %9, %1 : vector<8x128xi32>
    %11 = arith.extui %10 : vector<8x128xi1> to vector<8x128xi32>
    %12 = arith.sitofp %11 : vector<8x128xi32> to vector<8x128xf32>
    %13 = arith.truncf %12 : vector<8x128xf32> to vector<8x128xbf16>
    %14 = vector.extract_strided_slice %0 {offsets = [0, 2], sizes = [8, 1], strides = [1, 1]} : vector<8x8xi32> to vector<8x1xi32>
    %15 = vector.broadcast %14 : vector<8x1xi32> to vector<8x128xi32>
    %16 = arith.cmpi eq, %15, %1 : vector<8x128xi32>
    %17 = arith.extui %16 : vector<8x128xi1> to vector<8x128xi32>
    %18 = arith.sitofp %17 : vector<8x128xi32> to vector<8x128xf32>
    %19 = arith.truncf %18 : vector<8x128xf32> to vector<8x128xbf16>
    %20 = vector.extract_strided_slice %0 {offsets = [0, 3], sizes = [8, 1], strides = [1, 1]} : vector<8x8xi32> to vector<8x1xi32>
    %21 = vector.broadcast %20 : vector<8x1xi32> to vector<8x128xi32>
    %22 = arith.cmpi eq, %21, %1 : vector<8x128xi32>
    %23 = arith.extui %22 : vector<8x128xi1> to vector<8x128xi32>
    %24 = arith.sitofp %23 : vector<8x128xi32> to vector<8x128xf32>
    %25 = arith.truncf %24 : vector<8x128xf32> to vector<8x128xbf16>
    %26 = vector.extract_strided_slice %0 {offsets = [0, 4], sizes = [8, 1], strides = [1, 1]} : vector<8x8xi32> to vector<8x1xi32>
    %27 = vector.broadcast %26 : vector<8x1xi32> to vector<8x128xi32>
    %28 = arith.cmpi eq, %27, %1 : vector<8x128xi32>
    %29 = arith.extui %28 : vector<8x128xi1> to vector<8x128xi32>
    %30 = arith.sitofp %29 : vector<8x128xi32> to vector<8x128xf32>
    %31 = arith.truncf %30 : vector<8x128xf32> to vector<8x128xbf16>
    %32 = vector.extract_strided_slice %0 {offsets = [0, 5], sizes = [8, 1], strides = [1, 1]} : vector<8x8xi32> to vector<8x1xi32>
    %33 = vector.broadcast %32 : vector<8x1xi32> to vector<8x128xi32>
    %34 = arith.cmpi eq, %33, %1 : vector<8x128xi32>
    %35 = arith.extui %34 : vector<8x128xi1> to vector<8x128xi32>
    %36 = arith.sitofp %35 : vector<8x128xi32> to vector<8x128xf32>
    %37 = arith.truncf %36 : vector<8x128xf32> to vector<8x128xbf16>
    %38 = vector.extract_strided_slice %0 {offsets = [0, 6], sizes = [8, 1], strides = [1, 1]} : vector<8x8xi32> to vector<8x1xi32>
    %39 = vector.broadcast %38 : vector<8x1xi32> to vector<8x128xi32>
    %40 = arith.cmpi eq, %39, %1 : vector<8x128xi32>
    %41 = arith.extui %40 : vector<8x128xi1> to vector<8x128xi32>
    %42 = arith.sitofp %41 : vector<8x128xi32> to vector<8x128xf32>
    %43 = arith.truncf %42 : vector<8x128xf32> to vector<8x128xbf16>
    %44 = vector.extract_strided_slice %0 {offsets = [0, 7], sizes = [8, 1], strides = [1, 1]} : vector<8x8xi32> to vector<8x1xi32>
    %45 = vector.broadcast %44 : vector<8x1xi32> to vector<8x128xi32>
    %46 = arith.cmpi eq, %45, %1 : vector<8x128xi32>
    %47 = arith.extui %46 : vector<8x128xi1> to vector<8x128xi32>
    %48 = arith.sitofp %47 : vector<8x128xi32> to vector<8x128xf32>
    %49 = arith.truncf %48 : vector<8x128xf32> to vector<8x128xbf16>
    %50 = tpu.concatenate %7, %13, %19, %25, %31, %37, %43, %49 in 1 : vector<8x128xbf16>, vector<8x128xbf16>, vector<8x128xbf16>, vector<8x128xbf16>, vector<8x128xbf16>, vector<8x128xbf16>, vector<8x128xbf16>, vector<8x128xbf16> -> vector<8x1024xbf16>
    %c0_1 = arith.constant 0 : index
    %c0_2 = arith.constant 0 : index
    %51 = vector.load %arg2[%c0_1, %c0_2] : memref<1024x128xbf16, #tpu.memory_space<vmem>>, vector<1024x128xbf16>
    %cst = arith.constant dense<0.000000e+00> : vector<8x128xf32>
    %52 = tpu.matmul %50, %51, %cst {dimension_numbers = #tpu.dot_dimension_numbers<[1], [0], [0], [1], [0, 0, 1, 1], [], []>} : vector<8x1024xbf16>, vector<1024x128xbf16>, vector<8x128xf32> -> vector<8x128xf32>
    %53 = arith.truncf %52 : vector<8x128xf32> to vector<8x128xbf16>
    %c0_3 = arith.constant 0 : index
    %c0_4 = arith.constant 0 : index
    %54 = vector.load %arg3[%c0_3, %c0_4] : memref<128x768xbf16, #tpu.memory_space<vmem>>, vector<128x768xbf16>
    %cst_5 = arith.constant dense<0.000000e+00> : vector<8x768xf32>
    %55 = tpu.matmul %53, %54, %cst_5 {dimension_numbers = #tpu.dot_dimension_numbers<[1], [0], [0], [1], [0, 0, 1, 1], [], []>} : vector<8x128xbf16>, vector<128x768xbf16>, vector<8x768xf32> -> vector<8x768xf32>
    %c0_6 = arith.constant 0 : index
    %c0_7 = arith.constant 0 : index
    %56 = vector.load %arg5[%c0_6, %c0_7] : memref<1x800xf32, #tpu.memory_space<vmem>>, vector<1x768xf32>
    %57 = vector.broadcast %56 : vector<1x768xf32> to vector<8x768xf32>
    %58 = arith.addf %55, %57 : vector<8x768xf32>
    %cst_8 = arith.constant 0.000000e+00 : f32
    %59 = vector.broadcast %cst_8 : f32 to vector<8x768xf32>
    %60 = arith.maximumf %58, %59 : vector<8x768xf32>
    %61 = vector.extract_strided_slice %60 {offsets = [0, 0], sizes = [8, 32], strides = [1, 1]} : vector<8x768xf32> to vector<8x32xf32>
    %62 = vector.extract_strided_slice %60 {offsets = [0, 32], sizes = [8, 32], strides = [1, 1]} : vector<8x768xf32> to vector<8x32xf32>
    %63 = vector.extract_strided_slice %60 {offsets = [0, 64], sizes = [8, 32], strides = [1, 1]} : vector<8x768xf32> to vector<8x32xf32>
    %64 = vector.extract_strided_slice %60 {offsets = [0, 96], sizes = [8, 32], strides = [1, 1]} : vector<8x768xf32> to vector<8x32xf32>
    %65 = vector.extract_strided_slice %60 {offsets = [0, 128], sizes = [8, 32], strides = [1, 1]} : vector<8x768xf32> to vector<8x32xf32>
    %66 = vector.extract_strided_slice %60 {offsets = [0, 160], sizes = [8, 32], strides = [1, 1]} : vector<8x768xf32> to vector<8x32xf32>
    %67 = vector.extract_strided_slice %60 {offsets = [0, 192], sizes = [8, 32], strides = [1, 1]} : vector<8x768xf32> to vector<8x32xf32>
    %68 = vector.extract_strided_slice %60 {offsets = [0, 224], sizes = [8, 32], strides = [1, 1]} : vector<8x768xf32> to vector<8x32xf32>
    %69 = vector.extract_strided_slice %60 {offsets = [0, 256], sizes = [8, 32], strides = [1, 1]} : vector<8x768xf32> to vector<8x32xf32>
    %70 = arith.maximumf %61, %62 : vector<8x32xf32>
    %71 = arith.maximumf %63, %64 : vector<8x32xf32>
    %72 = arith.maximumf %65, %66 : vector<8x32xf32>
    %73 = arith.maximumf %67, %68 : vector<8x32xf32>
    %74 = arith.maximumf %70, %71 : vector<8x32xf32>
    %75 = arith.maximumf %72, %73 : vector<8x32xf32>
    %76 = arith.maximumf %74, %75 : vector<8x32xf32>
    %77 = arith.maximumf %76, %69 : vector<8x32xf32>
    %78 = vector.extract_strided_slice %60 {offsets = [0, 288], sizes = [8, 32], strides = [1, 1]} : vector<8x768xf32> to vector<8x32xf32>
    %79 = vector.extract_strided_slice %60 {offsets = [0, 320], sizes = [8, 32], strides = [1, 1]} : vector<8x768xf32> to vector<8x32xf32>
    %80 = vector.extract_strided_slice %60 {offsets = [0, 352], sizes = [8, 32], strides = [1, 1]} : vector<8x768xf32> to vector<8x32xf32>
    %81 = vector.extract_strided_slice %60 {offsets = [0, 384], sizes = [8, 32], strides = [1, 1]} : vector<8x768xf32> to vector<8x32xf32>
    %82 = vector.extract_strided_slice %60 {offsets = [0, 416], sizes = [8, 32], strides = [1, 1]} : vector<8x768xf32> to vector<8x32xf32>
    %83 = vector.extract_strided_slice %60 {offsets = [0, 448], sizes = [8, 32], strides = [1, 1]} : vector<8x768xf32> to vector<8x32xf32>
    %84 = vector.extract_strided_slice %60 {offsets = [0, 480], sizes = [8, 32], strides = [1, 1]} : vector<8x768xf32> to vector<8x32xf32>
    %85 = vector.extract_strided_slice %60 {offsets = [0, 512], sizes = [8, 32], strides = [1, 1]} : vector<8x768xf32> to vector<8x32xf32>
    %86 = arith.addf %78, %79 : vector<8x32xf32>
    %87 = arith.addf %80, %81 : vector<8x32xf32>
    %88 = arith.addf %82, %83 : vector<8x32xf32>
    %89 = arith.addf %84, %85 : vector<8x32xf32>
    %90 = arith.addf %86, %87 : vector<8x32xf32>
    %91 = arith.addf %88, %89 : vector<8x32xf32>
    %92 = arith.addf %90, %91 : vector<8x32xf32>
    %cst_9 = arith.constant 1.250000e-01 : f32
    %93 = vector.broadcast %cst_9 : f32 to vector<8x32xf32>
    %94 = arith.mulf %92, %93 : vector<8x32xf32>
    %95 = vector.extract_strided_slice %60 {offsets = [0, 544], sizes = [8, 32], strides = [1, 1]} : vector<8x768xf32> to vector<8x32xf32>
    %96 = vector.extract_strided_slice %60 {offsets = [0, 576], sizes = [8, 32], strides = [1, 1]} : vector<8x768xf32> to vector<8x32xf32>
    %97 = vector.extract_strided_slice %60 {offsets = [0, 608], sizes = [8, 32], strides = [1, 1]} : vector<8x768xf32> to vector<8x32xf32>
    %98 = vector.extract_strided_slice %60 {offsets = [0, 640], sizes = [8, 32], strides = [1, 1]} : vector<8x768xf32> to vector<8x32xf32>
    %99 = vector.extract_strided_slice %60 {offsets = [0, 672], sizes = [8, 32], strides = [1, 1]} : vector<8x768xf32> to vector<8x32xf32>
    %100 = vector.extract_strided_slice %60 {offsets = [0, 704], sizes = [8, 32], strides = [1, 1]} : vector<8x768xf32> to vector<8x32xf32>
    %101 = vector.extract_strided_slice %60 {offsets = [0, 736], sizes = [8, 32], strides = [1, 1]} : vector<8x768xf32> to vector<8x32xf32>
    %102 = arith.addf %95, %96 : vector<8x32xf32>
    %103 = arith.addf %97, %98 : vector<8x32xf32>
    %104 = arith.addf %99, %100 : vector<8x32xf32>
    %105 = arith.addf %102, %103 : vector<8x32xf32>
    %106 = arith.addf %104, %101 : vector<8x32xf32>
    %107 = arith.addf %105, %106 : vector<8x32xf32>
    %cst_10 = arith.constant 0.142857149 : f32
    %108 = vector.broadcast %cst_10 : f32 to vector<8x32xf32>
    %109 = arith.mulf %107, %108 : vector<8x32xf32>
    %110 = tpu.concatenate %77, %94, %109 in 1 : vector<8x32xf32>, vector<8x32xf32>, vector<8x32xf32> -> vector<8x96xf32>
    %111 = arith.truncf %110 : vector<8x96xf32> to vector<8x96xbf16>
    %c0_11 = arith.constant 0 : index
    %c0_12 = arith.constant 0 : index
    %112 = vector.load %arg4[%c0_11, %c0_12] : memref<96x32xbf16, #tpu.memory_space<vmem>>, vector<96x32xbf16>
    %cst_13 = arith.constant dense<0.000000e+00> : vector<8x32xf32>
    %113 = tpu.matmul %111, %112, %cst_13 {dimension_numbers = #tpu.dot_dimension_numbers<[1], [0], [0], [1], [0, 0, 1, 1], [], []>} : vector<8x96xbf16>, vector<96x32xbf16>, vector<8x32xf32> -> vector<8x32xf32>
    %c0_14 = arith.constant 0 : index
    %c768 = arith.constant 768 : index
    %114 = vector.load %arg5[%c0_14, %c768] : memref<1x800xf32, #tpu.memory_space<vmem>>, vector<1x32xf32>
    %115 = vector.broadcast %114 : vector<1x32xf32> to vector<8x32xf32>
    %116 = arith.addf %113, %115 : vector<8x32xf32>
    %c0_15 = arith.constant 0 : index
    %c0_16 = arith.constant 0 : index
    %117 = vector.load %arg6[%c0_15, %c0_16] : memref<8x32xf32, #tpu.memory_space<vmem>>, vector<8x32xf32>
    tpu.vector_store %arg6[%c0_15, %c0_16], %116 {strides = array<i32>} : memref<8x32xf32, #tpu.memory_space<vmem>>, vector<8x32xf32>,
    return
  }
  func.func @transform_0(%arg0: i32) -> (i32, i32) {
    %c0_i32 = arith.constant 0 : i32
    %c0_i32_0 = arith.constant 0 : i32
    return %arg0, %c0_i32 : i32, i32
  }
  func.func @transform_1(%arg0: i32) -> (i32, i32) {
    %c0_i32 = arith.constant 0 : i32
    %c0_i32_0 = arith.constant 0 : i32
    %c0_i32_1 = arith.constant 0 : i32
    return %c0_i32, %c0_i32_0 : i32, i32
  }
  func.func @transform_2(%arg0: i32) -> (i32, i32) {
    %c0_i32 = arith.constant 0 : i32
    %c0_i32_0 = arith.constant 0 : i32
    %c0_i32_1 = arith.constant 0 : i32
    return %c0_i32, %c0_i32_0 : i32, i32
  }
  func.func @transform_3(%arg0: i32) -> (i32, i32) {
    %c0_i32 = arith.constant 0 : i32
    %c0_i32_0 = arith.constant 0 : i32
    %c0_i32_1 = arith.constant 0 : i32
    return %c0_i32, %c0_i32_0 : i32, i32
  }
  func.func @transform_4(%arg0: i32) -> (i32, i32) {
    %c0_i32 = arith.constant 0 : i32
    %c0_i32_0 = arith.constant 0 : i32
    %c0_i32_1 = arith.constant 0 : i32
    return %c0_i32, %c0_i32_0 : i32, i32
  }
  func.func @transform_5(%arg0: i32) -> (i32, i32) {
    %c0_i32 = arith.constant 0 : i32
    %c0_i32_0 = arith.constant 0 : i32
    return %arg0, %c0_i32 : i32, i32
  }
}

</mosaic_0001>

<bundles_post_ra>
// kernel: tpu_custom_call.1
= control target key start
LH: loop header
LB: loop body
LE: loop exit
PB: predicated region body
PF: predicated region fallthrough
CT: control target
= control target key end

     0   :  { %10 = vsyncpa [#allocation3], 0  ;;  %s2628_s0 = inlined_call_operand.vmem [shape: s32[16,8], index: 0, kind: input, shape index: {}]   ;;  %s2629_s1 = inlined_call_operand.hbm [shape: bf16[1024,128], index: 1, kind: input, shape index: {}]   ;;  %s2630_s2 = inlined_call_operand.hbm [shape: bf16[128,768], index: 2, kind: input, shape index: {}]   ;;  %s2631_s3 = inlined_call_operand.vmem [shape: bf16[96,32], index: 3, kind: input, shape index: {}]   ;;  %s2632_s4 = inlined_call_operand.vmem [shape: f32[1,800], index: 4, kind: input, shape index: {}]   ;;  %s2633_s5 = inlined_call_operand.hbm [shape: f32[16,32], index: 5, kind: output, shape index: {}]  }
   0x1   :  { %11 = vsyncpa [#allocation6], 0 }
   0x2   :  { %12 = vsyncpa [#allocation4], 0 }
   0x3   :  { %14 = vsyncpa [#allocation4 + $0x1], 0  ;;  %s2391_s18 = smov 0   ;;  %s2393_s19 = smov 0  }
   0x4   :  { %s2395_s20 = smov 0   ;;  %s2397_s21 = smov 0  }
   0x5 LB: > { %s2412_s22 = sadd.s32 4294967295, %s2338_s21   ;;  %s1704_s23 = sadd.s32 4294967294, %s2338_s21   ;;  %s2338_s21 = sphi %s2397_s21, %s2651_s21   ;;  %s2334_s20 = sphi %s2395_s20, %s2650_s20   ;;  %s2330_s19 = sphi %s2393_s19, %s2649_s19   ;;  %s2326_s18 = sphi %s2391_s18, %s2648_s18  }
   0x6   : > { %s2416_s24 = sadd.s32 1, %s2338_s21   ;;  %s137_s25 = sadd.s32 1, %s2334_s20 }
   0x7   : > { %s134_s26 = ssub.s32 %s2338_s21, %s2416_s24  ;;  %p147_p0 = scmp.ne.s32.totalorder %s2334_s20, %s2330_s19 }
   0x8   : > { %p135_p1 = scmp.eq.s32.totalorder %s134_s26, 0  ;;  %p148_p2 = scmp.eq.s32.totalorder %s2412_s22, 1 }
   0x9   : > { %p153_p3 = scmp.ne.s32.totalorder %s2330_s19, %s2326_s18  ;;  %p154_p4 = scmp.eq.s32.totalorder %s1704_s23, 1 }
   0xa   : > { %s2427_s27 = scalar_select %p135_p1, %s2334_s20, %s137_s25  }
   0xb   : > { %p2429_p5 = por %p148_p2, %p147_p0  ;;  %p2433_p6 = por %p154_p4, %p153_p3 }
   0xc   : > { %p1705_p7 = scmp.ge.s32.totalorder %s2338_s21, 1  ;;  %p161_p8 = scmp.lt.s32.totalorder %s2338_s21, 3 }
   0xd   : > { %s2637_s28 = scalar_select %p2429_p5, 1, 0 }
   0xe   : > { %s2638_s29 = scalar_select %p2433_p6, 1, 0 }
   0xf   : > { %p2634_p9 = scmp.eq.s32.totalorder %s2412_s22, 0  ;;  %p2440_p10 = pnand %p1705_p7, %p161_p8 }
  0x10   : > { %s2340_s6 = smov [#allocation2]   ;;  %s2341_s9 = smov [#allocation5]  }
  0x11   : > { %s2639_s30 = scalar_select %p2440_p10, 1, 0 }
  0x12   : > { %s173_s7 = sshll.u32 %s2340_s6, 4  ;;  %p1983_p11 = pneg %p2440_p10  ;;  %s174_s7 = int_to_ptr.vmem [resolvable:$true] %s173_s7 }
  0x13   : > { %s186_s10 = sshll.u32 %s2341_s9, 4  ;;  %s2212_s13 = scalar_lea.hbm %s2629_s1, 8192  ;;  %s2452_s10 = int_to_ptr.vmem [resolvable:$true] %s186_s10 }
  0x14   : > { %p2448_p12 = pnand %p2634_p9, %p1983_p11  ;;  %p2213_p13 = scmp.ne.s32.totalorder %s2629_s1, %s2212_s13 }
  0x15   : > { %p2219_p3 = scmp.lt.u32.totalorder %s2212_s13, %s2629_s1 }
  0x16   : > { %p2214_p0 = pneg %p2448_p12 }
  0x18   : > { %p2215_p1 = pnand %p2214_p0, %p2213_p13 }
  0x1a   : > { %p2216_p2 = pneg %p2215_p1 }
  0x1c   : > { %p2221_p4 = pnand %p2219_p3, %p2216_p2 }
  0x1e   : > { %2224 = shalt.err (!%p2221_p4)
}
  0x1f   : > { %s2225_s23 = scalar_lea.vmem %s174_s7, 8192  ;;  %p2233_p9 = scmp.lt.s32.totalorder %s174_s7, %s174_s7 }
  0x20   : > { %p2226_p7 = scmp.ne.s32.totalorder %s174_s7, %s2225_s23  ;;  %p2234_p6 = scmp.lt.s32.totalorder %s2225_s23, %s2225_s23 }
  0x22   : > { %p2228_p8 = pnand %p2226_p7, %p2214_p0  ;;  %p2235_p5 = por %p2234_p6, %p2233_p9 }
  0x24   : > { %p2229_p11 = pneg %p2228_p8 }
  0x26   : > { %p2236_p10 = pnand %p2235_p5, %p2229_p11 }
  0x28   : > { %2239 = shalt.err (!%p2236_p10)
}
  0x29   : > { %s2342_s25 = smov 64   ;;  %s2343_s26 = smov 4  }
  0x2a   : > { %1986 = dma.hbm_to_vmem [thread:$0]  (!%p2448_p12), %s2629_s1, 8192, %s174_s7, [#allocation3], %s2342_s25, %s2342_s25, %s2343_s26  }
  0x2b   : > { %s2240_s13 = scalar_lea.hbm %s2630_s2, 6144 }
  0x2c   : > { %p2241_p13 = scmp.ne.s32.totalorder %s2630_s2, %s2240_s13  ;;  %p2247_p9 = scmp.lt.u32.totalorder %s2240_s13, %s2630_s2 }
  0x2e   : > { %p2243_p5 = pnand %p2241_p13, %p2214_p0 }
  0x30   : > { %p2244_p6 = pneg %p2243_p5 }
  0x32   : > { %p2249_p10 = pnand %p2247_p9, %p2244_p6 }
  0x34   : > { %2252 = shalt.err (!%p2249_p10)
}
  0x35   : > { %s2253_s7 = scalar_lea.vmem %s2452_s10, 6144  ;;  %p2261_p4 = scmp.lt.s32.totalorder %s2452_s10, %s2452_s10 }
  0x36   : > { %p2254_p1 = scmp.ne.s32.totalorder %s2452_s10, %s2253_s7  ;;  %p2262_p7 = scmp.lt.s32.totalorder %s2253_s7, %s2253_s7 }
  0x38   : > { %p2256_p2 = pnand %p2254_p1, %p2214_p0  ;;  %p2263_p8 = por %p2262_p7, %p2261_p4 }
  0x3a   : > { %p2257_p3 = pneg %p2256_p2 }
  0x3c   : > { %p2264_p11 = pnand %p2263_p8, %p2257_p3 }
  0x3e   : > { %2267 = shalt.err (!%p2264_p11)
}
  0x3f   : > { %s2344_s23 = smov 384   ;;  %s2345_s25 = smov 24  }
  0x40   : > { %1989 = dma.hbm_to_vmem [thread:$0]  (!%p2448_p12), %s2630_s2, 6144, %s2452_s10, [#allocation6], %s2344_s23, %s2344_s23, %s2345_s25  }
  0x41   : > { %p2641_p13 = scmp.ne.s32.totalorder %s2639_s30, 0 }
  0x42   : > { %p2642_p0 = scmp.eq.s32.totalorder (!%p2641_p13), %s2412_s22, 0 }
  0x43   : > { %215 = sbr.rel (%p2641_p13) target bundleno = 1307 (0x51b), region = 40 }
  0x4a   : > { %2313 = dma.done.wait (%p2642_p0), [#allocation3], 8192   ;;  %p2643_p5 = pmov %p2642_p0 }
  0x4b   : > { %p2644_p6 = pmov %p2642_p0 }
  0x4c   : > { %2315 = vsyncadd (%p2643_p5), [#allocation3], 4294959104 }
  0x4d   : > { %2317 = dma.done.wait (%p2644_p6), [#allocation6], 6144   ;;  %p2645_p9 = pmov %p2642_p0 }
  0x4e   : > { %p246_p10 = scmp.lt.s32.totalorder %s2412_s22, 1  ;;  %v2346_v0 = vmov 3   ;;  %v2347_v1 = vmov 1   ;;  %v2070_v3 = vld [vmem:[#allocation2 + $0x40] sm:$0xff]   ;;  %v2348_v7 = vmov 2   ;;  %v2349_v8 = vmov 0  }
  0x4f   : > { %2319 = vsyncadd (%p2645_p9), [#allocation6], 4294961152  ;;  %2053 = vset.pattern.permute.xlu1 %v2346_v0  ;;  %2051 = vset.pattern.permute.xlu0 %v2347_v1  ;;  %v2071_v4 = vld [vmem:[#allocation2 + $0xc0] sm:$0xff]   ;;  %v2074_v9 = vld [vmem:[#allocation2 + $0x48] sm:$0xff]   ;;  %v2350_v14 = vmov 5   ;;  %v2351_v15 = vmov 4   ;;  %v252_v43 = vlaneseq }
  0x50   : > { %s247_s30 = scalar_select %p246_p10, %s2412_s22, 1  ;;  %1862 = vmatprep.subr.bf16.mxu0 %v2070_v3  ;;  %v2072_v5 = vld [vmem:[#allocation2] sm:$0xff]   ;;  %1884 = vmatprep.subr.bf16.mxu1 %v2071_v4  ;;  %v2075_v10 = vld [vmem:[#allocation2 + $0xc8] sm:$0xff]   ;;  %v2078_v13 = vld [vmem:[#allocation2 + $0x50] sm:$0xff]   ;;  %v2352_v21 = vmov 7   ;;  %v2353_v27 = vmov 6  }
  0x51   : > { %v2073_v6 = vld [vmem:[#allocation2 + $0x80] sm:$0xff]   ;;  %1863 = vmatpush3.bf16.msra.mxu0 %v2072_v5  ;;  %v2076_v11 = vld [vmem:[#allocation2 + $0x8] sm:$0xff]   ;;  %v2079_v16 = vld [vmem:[#allocation2 + $0xd0] sm:$0xff]   ;;  %v2518_v44 = vand.u32 127, %v252_v43  ;;  %v2354_v47 = vmov 1.0|1.0  }
  0x52   : > { %s1713_s8 = sshll.u32 %s247_s30, 3  ;;  %1885 = vmatpush3.bf16.msra.mxu1 %v2073_v6  ;;  %1864 = vmatprep.subr.bf16.mxu0 %v2074_v9  ;;  %v2077_v12 = vld [vmem:[#allocation2 + $0x88] sm:$0xff]   ;;  %v2080_v17 = vld [vmem:[#allocation2 + $0x10] sm:$0xff]   ;;  %v2082_v19 = vld [vmem:[#allocation2 + $0x58] sm:$0xff]   ;;  %s2355_s14 = smov 96  }
  0x53   : > { %s249_s11 = scalar_lea.vmem %s2628_s0, %s1713_s8  ;;  %1886 = vmatprep.subr.bf16.mxu1 %v2075_v10  ;;  %v2081_v18 = vld [vmem:[#allocation2 + $0x90] sm:$0xff]   ;;  %v2083_v20 = vld [vmem:[#allocation2 + $0xd8] sm:$0xff]   ;;  %v2086_v24 = vld [vmem:[#allocation2 + $0x60] sm:$0xff]   ;;  %s2356_s15 = smov 64  }
  0x54   : > { %v251_v2 = vld [vmem:[%s249_s11] sm:$0xff]  ;;  %v2084_v22 = vld [vmem:[#allocation2 + $0x18] sm:$0xff]   ;;  %v2090_v29 = vld [vmem:[#allocation2 + $0x68] sm:$0xff]   ;;  %s2359_s12 = smov 32   ;;  %s243_s13 = sand.u32 1, %s2330_s19  }
  0x55   : > { %276 = vperm.xlu1 %2053, %v251_v2   ;;  %262 = vperm.xlu0 %2051, %v251_v2   ;;  %v2085_v23 = vld [vmem:[#allocation2 + $0x98] sm:$0xff]   ;;  %v2087_v25 = vld [vmem:[#allocation2 + $0xe0] sm:$0xff]   ;;  %v2091_v30 = vld [vmem:[#allocation2 + $0xe8] sm:$0xff]   ;;  %s1859_s17 = sshll.u32 %s2412_s22, 7  ;;  %s1610_s22 = scalar_lea.sflag [#allocation4], %s243_s13 }
  0x56   : > { %1865 = vmatpush3.bf16.msra.mxu0 %v2076_v11  ;;  %1887 = vmatpush3.bf16.msra.mxu1 %v2077_v12  ;;  %v2088_v26 = vld [vmem:[#allocation2 + $0x20] sm:$0xff]   ;;  %v2092_v31 = vld [vmem:[#allocation2 + $0x28] sm:$0xff]   ;;  %v2094_v33 = vld [vmem:[#allocation2 + $0x70] sm:$0xff]   ;;  %s2585_s6 = scalar_lea.hbm %s2633_s5, %s1859_s17  ;;  %p2646_p1 = scmp.ne.s32.totalorder %s2637_s28, 0 }
  0x57   : > { %1866 = vmatprep.subr.bf16.mxu0 %v2078_v13  ;;  %1888 = vmatprep.subr.bf16.mxu1 %v2079_v16  ;;  %v2089_v28 = vld [vmem:[#allocation2 + $0xa0] sm:$0xff]   ;;  %v2093_v32 = vld [vmem:[#allocation2 + $0xa8] sm:$0xff]   ;;  %v2095_v34 = vld [vmem:[#allocation2 + $0xf0] sm:$0xff]   ;;  %s2360_s8 = smov [#allocation7]  }
  0x58   : > { %v2096_v35 = vld [vmem:[#allocation2 + $0x30] sm:$0xff]   ;;  %v2098_v37 = vld [vmem:[#allocation2 + $0x78] sm:$0xff]   ;;  %v2102_v41 = vld [vmem:[#allocation2 + $0x140] sm:$0xff]   ;;  %s2272_s10 = sshll.u32 %s2360_s8, 4  ;;  %s2273_s10 = int_to_ptr.vmem [resolvable:$false] %s2272_s10 }
  0x59   : > { %2054 = vset.pattern.permute.xlu1 %v2348_v7  ;;  %2052 = vset.pattern.permute.xlu0 %v2349_v8  ;;  %v2097_v36 = vld [vmem:[#allocation2 + $0xb0] sm:$0xff]   ;;  %v2099_v38 = vld [vmem:[#allocation2 + $0xf8] sm:$0xff]   ;;  %v2103_v42 = vld [vmem:[#allocation2 + $0x1c0] sm:$0xff]   ;;  %s2274_s9 = scalar_lea.vmem %s2273_s10, 256 }
  0x5a   : > { %269 = vperm.xlu1 %2054, %v251_v2   ;;  %255 = vperm.xlu0 %2052, %v251_v2   ;;  %v2100_v39 = vld [vmem:[#allocation2 + $0x38] sm:$0xff]   ;;  %v2105_v50 = vld [vmem:[#allocation2 + $0x180] sm:$0xff]   ;;  %v2107_v52 = vld [vmem:[#allocation2 + $0x1c8] sm:$0xff]  }
  0x5b   : > { %1867 = vmatpush3.bf16.msra.mxu0 %v2080_v17  ;;  %1889 = vmatpush3.bf16.msra.mxu1 %v2081_v18  ;;  %v2101_v40 = vld [vmem:[#allocation2 + $0xb8] sm:$0xff]   ;;  %v2104_v51 = vld [vmem:[#allocation2 + $0x100] sm:$0xff]   ;;  %v2106_v53 = vld [vmem:[#allocation2 + $0x148] sm:$0xff]  }
  0x5c   : > { %1868 = vmatprep.subr.bf16.mxu0 %v2082_v19  ;;  %1890 = vmatprep.subr.bf16.mxu1 %v2083_v20  ;;  %v2109_v54 = vld [vmem:[#allocation2 + $0x188] sm:$0xff]   ;;  %v2111_v56 = vld [vmem:[#allocation2 + $0x1d0] sm:$0xff]   ;;  %v2115_v61 = vld [vmem:[#allocation2 + $0x1d8] sm:$0xff]  }
  0x5d   : > { %v2108_v55 = vld [vmem:[#allocation2 + $0x108] sm:$0xff]   ;;  %v2110_v58 = vld [vmem:[#allocation2 + $0x150] sm:$0xff]   ;;  %v2114_v62 = vld [vmem:[#allocation2 + $0x158] sm:$0xff]  }
  0x5e   : > { %2055 = vset.pattern.permute.xlu1 %v2350_v14  ;;  %2056 = vset.pattern.permute.xlu0 %v2351_v15  ;;  %v2113_v59 = vld [vmem:[#allocation2 + $0x190] sm:$0xff]   ;;  %v2117_v0 = vld [vmem:[#allocation2 + $0x198] sm:$0xff]   ;;  %v2118_v3 = vld [vmem:[#allocation2 + $0x160] sm:$0xff]  }
  0x5f   : > { %290 = vperm.xlu1 %2055, %v251_v2   ;;  %283 = vperm.xlu0 %2056, %v251_v2   ;;  %v2112_v60 = vld [vmem:[#allocation2 + $0x110] sm:$0xff]   ;;  %v2116_v1 = vld [vmem:[#allocation2 + $0x118] sm:$0xff]   ;;  %v2121_v4 = vld [vmem:[#allocation2 + $0x1a0] sm:$0xff]  }
  0x60   : > { %1869 = vmatpush3.bf16.msra.mxu0 %v2084_v22  ;;  %1891 = vmatpush3.bf16.msra.mxu1 %v2085_v23  ;;  %v2120_v5 = vld [vmem:[#allocation2 + $0x120] sm:$0xff]   ;;  %v2123_v6 = vld [vmem:[#allocation2 + $0x1e8] sm:$0xff]   ;;  %v2127_v11 = vld [vmem:[#allocation2 + $0x1f0] sm:$0xff]  }
  0x61   : > { %1870 = vmatprep.subr.bf16.mxu0 %v2086_v24  ;;  %1892 = vmatprep.subr.bf16.mxu1 %v2087_v25  ;;  %v2122_v7 = vld [vmem:[#allocation2 + $0x168] sm:$0xff]   ;;  %v2126_v12 = vld [vmem:[#allocation2 + $0x170] sm:$0xff]   ;;  %v2131_v15 = vld [vmem:[#allocation2 + $0x1f8] sm:$0xff]  }
  0x62   : > { %v2124_v9 = vld [vmem:[#allocation2 + $0x1a8] sm:$0xff]   ;;  %v2128_v13 = vld [vmem:[#allocation2 + $0x1b0] sm:$0xff]   ;;  %v2130_v16 = vld [vmem:[#allocation2 + $0x178] sm:$0xff]  }
  0x63   : > { %2057 = vset.pattern.permute.xlu1 %v2352_v21  ;;  %2069 = vset.pattern.permute.xlu0 %v2352_v21  ;;  %v2125_v10 = vld [vmem:[#allocation2 + $0x128] sm:$0xff]   ;;  %v2129_v14 = vld [vmem:[#allocation2 + $0x130] sm:$0xff]   ;;  %v2132_v19 = vld [vmem:[#allocation2 + $0x1b8] sm:$0xff]  }
  0x64   : > { %304 = vperm.xlu1 %2057, %v251_v2   ;;  %1871 = vmatpush3.bf16.msra.mxu0 %v2088_v26  ;;  %v2133_v20 = vld [vmem:[#allocation2 + $0x138] sm:$0xff]   ;;  %v2137_v23 = vld [vmem:[#allocation5 + $0x8] ss:$24 sps:$4 sm:$0xff]   ;;  %v2139_v24 = vld [vmem:[#allocation5 + $0xc] ss:$24 sps:$4 sm:$0xff]  }
  0x65   : > { %1893 = vmatpush3.bf16.msra.mxu1 %v2089_v28  ;;  %1872 = vmatprep.subr.bf16.mxu0 %v2090_v29  ;;  %v2134_v21 = vld [vmem:[#allocation5] ss:$24 sps:$4 sm:$0xff]   ;;  %v2136_v22 = vld [vmem:[#allocation5 + $0x4] ss:$24 sps:$4 sm:$0xff]   ;;  %v2142_v25 = vld [vmem:[#allocation5 + $0x34] ss:$24 sps:$4 sm:$0xff]  }
  0x66   : > { %1894 = vmatprep.subr.bf16.mxu1 %v2091_v30  ;;  %v2145_v26 = vld [vmem:[#allocation5 + $0x3c] ss:$24 sps:$4 sm:$0xff]   ;;  %v2143_v28 = vld [vmem:[#allocation5 + $0x38] ss:$24 sps:$4 sm:$0xff]   ;;  %v2151_v30 = vld [vmem:[#allocation5 + $0x6c] ss:$24 sps:$4 sm:$0xff]  }
  0x67   : > { %v2148_v29 = vld [vmem:[#allocation5 + $0x64] ss:$24 sps:$4 sm:$0xff]  }
  0x68   : > { %2058 = vset.pattern.permute.xlu1 %v2353_v27  ;;  %1873 = vmatpush3.bf16.msra.mxu0 %v2092_v31  ;;  %v2140_v27 = vld [vmem:[#allocation5 + $0x30] ss:$24 sps:$4 sm:$0xff]   ;;  %v2146_v31 = vld [vmem:[#allocation5 + $0x60] ss:$24 sps:$4 sm:$0xff]  }
  0x69   : > { %297 = vperm.xlu1 %2058, %v251_v2   ;;  %1895 = vmatpush3.bf16.msra.mxu1 %v2093_v32  ;;  %v2119_v2 = vld [vmem:[#allocation2 + $0x1e0] sm:$0xff]  }
  0x6a   : > { %1874 = vmatprep.subr.bf16.mxu0 %v2094_v33  ;;  %1896 = vmatprep.subr.bf16.mxu1 %v2095_v34  ;;  %v2149_v32 = vld [vmem:[#allocation5 + $0x68] ss:$24 sps:$4 sm:$0xff]   ;;  %v2154_v33 = vld [vmem:[#allocation5 + $0x94] ss:$24 sps:$4 sm:$0xff]  }
  0x6b   : > { %v2157_v34 = vld [vmem:[#allocation5 + $0x9c] ss:$24 sps:$4 sm:$0xff]  }
  0x6c   : > { %1875 = vmatpush3.bf16.msra.mxu0 %v2096_v35  ;;  %v2152_v35 = vld [vmem:[#allocation5 + $0x90] ss:$24 sps:$4 sm:$0xff]  }
  0x6d   : > { %1897 = vmatpush3.bf16.msra.mxu1 %v2097_v36  ;;  %1876 = vmatprep.subr.bf16.mxu0 %v2098_v37  ;;  %v2155_v36 = vld [vmem:[#allocation5 + $0x98] ss:$24 sps:$4 sm:$0xff]   ;;  %v2160_v37 = vld [vmem:[#allocation5 + $0xc4] ss:$24 sps:$4 sm:$0xff]  }
  0x6e   : > { %1898 = vmatprep.subr.bf16.mxu1 %v2099_v38  ;;  %v2163_v38 = vld [vmem:[#allocation5 + $0xcc] ss:$24 sps:$4 sm:$0xff]  }
  0x70   : > { %1877 = vmatpush3.bf16.msra.mxu0 %v2100_v39  ;;  %v2158_v39 = vld [vmem:[#allocation5 + $0xc0] ss:$24 sps:$4 sm:$0xff]  }
  0x71   : > { %1899 = vmatpush3.bf16.msra.mxu1 %v2101_v40  ;;  %1906 = vmatprep.subr.bf16.mxu0 %v2102_v41  ;;  %v2161_v40 = vld [vmem:[#allocation5 + $0xc8] ss:$24 sps:$4 sm:$0xff]   ;;  %v2166_v41 = vld [vmem:[#allocation5 + $0xf4] ss:$24 sps:$4 sm:$0xff]  }
  0x72   : > { %1928 = vmatprep.subr.bf16.mxu1 %v2103_v42  ;;  %v2169_v42 = vld [vmem:[#allocation5 + $0xfc] ss:$24 sps:$4 sm:$0xff]  }
  0xd4   : > { %v263_v45 = vpop.permute.xlu0 %262  ;;  %v277_v46 = vpop.permute.xlu1 %276 }
  0xd5   : > { %vm264_vm0 = vcmp.eq.s32.totalorder %v263_v45, %v2518_v44  ;;  %vm278_vm1 = vcmp.eq.s32.totalorder %v277_v46, %v2518_v44  ;;  %v2167_v45 = vld [vmem:[#allocation5 + $0xf8] ss:$24 sps:$4 sm:$0xff]   ;;  %v2172_v46 = vld [vmem:[#allocation5 + $0x124] ss:$24 sps:$4 sm:$0xff]  }
  0xd6   : > { %vm1786_vm2 = vmpackc.low %vm264_vm0, %vm264_vm0  ;;  %vm2358_vm0 = vmmov 0  }
  0xd7   : > { %1787 = vmatprep.mubr.msk.bf16.mxu0 %vm1786_vm2, %v2354_v47  ;;  %vm1790_vm3 = vmpackc.low %vm278_vm1, %vm278_vm1  ;;  %vm1504_vm1 = vcmask 261120   ;;  %vm1506_vm2 = vcmask 523264  }
  0xd8   : > { %1791 = vmatprep.mubr.msk.bf16.mxu1 %vm1790_vm3, %v2354_v47  ;;  %vm1564_vm3 = vcmask 785408  }
  0xd9   : > { %v270_v48 = vpop.permute.xlu1 %269  ;;  %v256_v49 = vpop.permute.xlu0 %255 }
  0xda   : > { %vm271_vm4 = vcmp.eq.s32.totalorder %v270_v48, %v2518_v44  ;;  %vm257_vm5 = vcmp.eq.s32.totalorder %v256_v49, %v2518_v44  ;;  %v2175_v48 = vld [vmem:[#allocation5 + $0x12c] ss:$24 sps:$4 sm:$0xff]   ;;  %v2173_v49 = vld [vmem:[#allocation5 + $0x128] ss:$24 sps:$4 sm:$0xff]  }
  0xdb   : > { %vm1792_vm6 = vmpackc.low %vm271_vm4, %vm271_vm4 }
  0xdc   : > { %vm1788_vm7 = vmpackc.low %vm257_vm5, %vm257_vm5  ;;  %1793 = vmatmul.mubr.msk.bf16.vlgmr.msra.gmra.mrb[0].mxu1 %vm1792_vm6, %v2354_v47 }
  0xdd   : > { %1789 = vmatmul.mubr.msk.bf16.vlgmr.msra.gmra.mrb[0].mxu0 %vm1788_vm7, %v2354_v47  ;;  %1929 = vmatpush3.bf16.msra.mxu1 %v2105_v50  ;;  %v2178_v50 = vld [vmem:[#allocation5 + $0x154] ss:$24 sps:$4 sm:$0xff]  }
  0xde   : > { %1907 = vmatpush3.bf16.msra.mxu0 %v2104_v51  ;;  %1930 = vmatprep.subr.bf16.mxu1 %v2107_v52  ;;  %v291_v57 = vpop.permute.xlu1 %290  ;;  %v284_v18 = vpop.permute.xlu0 %283  ;;  %v2176_v51 = vld [vmem:[#allocation5 + $0x150] ss:$24 sps:$4 sm:$0xff]   ;;  %v2181_v52 = vld [vmem:[#allocation5 + $0x15c] ss:$24 sps:$4 sm:$0xff]  }
  0xdf   : > { %1908 = vmatprep.subr.bf16.mxu0 %v2106_v53  ;;  %vm292_vm8 = vcmp.eq.s32.totalorder %v291_v57, %v2518_v44  ;;  %vm285_vm13 = vcmp.eq.s32.totalorder %v284_v18, %v2518_v44  ;;  %v2179_v53 = vld [vmem:[#allocation5 + $0x158] ss:$24 sps:$4 sm:$0xff]  }
  0xe0   : > { %vm1794_vm9 = vmpackc.low %vm292_vm8, %vm292_vm8  ;;  %v2185_v18 = vld [vmem:[#allocation5 + $0x40] ss:$24 sps:$4 sm:$0xff]  }
  0xe1   : > { %1931 = vmatpush3.bf16.msra.mxu1 %v2109_v54  ;;  %1795 = vmatprep.mubr.msk.bf16.mxu0 %vm1794_vm9, %v2354_v47  ;;  %vm1796_vm15 = vmpackc.low %vm285_vm13, %vm285_vm13  ;;  %v2184_v54 = vld [vmem:[#allocation5 + $0x14] ss:$24 sps:$4 sm:$0xff]  }
  0xe2   : > { %1909 = vmatpush3.bf16.msra.mxu0 %v2108_v55  ;;  %1932 = vmatprep.subr.bf16.mxu1 %v2111_v56 }
  0xe3   : > { %1910 = vmatprep.subr.bf16.mxu0 %v2110_v58  ;;  %v305_v63 = vpop.permute.xlu1 %304 }
  0xe4   : > { %vm306_vm10 = vcmp.eq.s32.totalorder %v305_v63, %v2518_v44 }
  0xe5   : > { %1933 = vmatpush3.bf16.msra.mxu1 %v2113_v59  ;;  %vm1798_vm11 = vmpackc.low %vm306_vm10, %vm306_vm10 }
  0xe6   : > { %1911 = vmatpush3.bf16.msra.mxu0 %v2112_v60  ;;  %1934 = vmatprep.subr.bf16.mxu1 %v2115_v61 }
  0xe7   : > { %1912 = vmatprep.subr.bf16.mxu0 %v2114_v62  ;;  %1799 = vmatprep.mubr.msk.bf16.mxu1 %vm1798_vm11, %v2354_v47 }
  0xe8   : > { %v298_v17 = vpop.permute.xlu1 %297 }
  0xe9   : > { %1935 = vmatpush3.bf16.msra.mxu1 %v2117_v0  ;;  %vm299_vm12 = vcmp.eq.s32.totalorder %v298_v17, %v2518_v44  ;;  %v2164_v44 = vld [vmem:[#allocation5 + $0xf0] ss:$24 sps:$4 sm:$0xff]   ;;  %v2187_v17 = vld [vmem:[#allocation5 + $0x44] ss:$24 sps:$4 sm:$0xff]  }
  0xea   : > { %1913 = vmatpush3.bf16.msra.mxu0 %v2116_v1  ;;  %1936 = vmatprep.subr.bf16.mxu1 %v2119_v2  ;;  %vm1800_vm14 = vmpackc.low %vm299_vm12, %vm299_vm12 }
  0xeb   : > { %1914 = vmatprep.subr.bf16.mxu0 %v2118_v3 }
  0xed   : > { %1937 = vmatpush3.bf16.msra.mxu1 %v2121_v4 }
  0xee   : > { %1915 = vmatpush3.bf16.msra.mxu0 %v2120_v5  ;;  %1938 = vmatprep.subr.bf16.mxu1 %v2123_v6 }
  0xef   : > { %1916 = vmatprep.subr.bf16.mxu0 %v2122_v7 }
  0xf1   : > { %1939 = vmatpush3.bf16.msra.mxu1 %v2124_v9 }
  0xf2   : > { %1917 = vmatpush3.bf16.msra.mxu0 %v2125_v10  ;;  %1940 = vmatprep.subr.bf16.mxu1 %v2127_v11 }
  0xf3   : > { %1918 = vmatprep.subr.bf16.mxu0 %v2126_v12 }
  0xf5   : > { %1941 = vmatpush3.bf16.msra.mxu1 %v2128_v13 }
  0xf6   : > { %1919 = vmatpush3.bf16.msra.mxu0 %v2129_v14  ;;  %1942 = vmatprep.subr.bf16.mxu1 %v2131_v15  ;;  %v2182_v15 = vld [vmem:[#allocation5 + $0x10] ss:$24 sps:$4 sm:$0xff]  }
  0xf7   : > { %1920 = vmatprep.subr.bf16.mxu0 %v2130_v16 }
  0xf9   : > { %1943 = vmatpush3.bf16.msra.mxu1 %v2132_v19  ;;  %v2190_v19 = vld [vmem:[#allocation5 + $0x74] ss:$24 sps:$4 sm:$0xff]  }
  0xfa   : > { %1921 = vmatpush3.bf16.msra.mxu0 %v2133_v20  ;;  %1344 = vmatprep.subr.bf16.mxu1 %v2139_v24  ;;  %v2188_v20 = vld [vmem:[#allocation5 + $0x70] ss:$24 sps:$4 sm:$0xff]  }
  0xfb   : > { %1303 = vmatprep.subr.bf16.mxu0 %v2136_v22  ;;  %v2191_v22 = vld [vmem:[#allocation5 + $0xa0] ss:$24 sps:$4 sm:$0xff]   ;;  %v2194_v24 = vld [vmem:[#allocation5 + $0xd0] ss:$24 sps:$4 sm:$0xff]  }
  0xfc   : > { %1801 = vmatmul.mubr.msk.bf16.vlgmr.msra.gmra.mrb[4].mxu1 %vm1800_vm14, %v2354_v47 }
  0xfd   : > { %1797 = vmatmul.mubr.msk.bf16.vlgmr.msra.gmra.mrb[4].mxu0 %vm1796_vm15, %v2354_v47  ;;  %1376 = vmatprep.mubr.bf16.mxu1 %v2349_v8  ;;  %v2170_v47 = vld [vmem:[#allocation5 + $0x120] ss:$24 sps:$4 sm:$0xff]  }
  0xfe   : > { %1335 = vmatprep.mubr.bf16.mxu0 %v2349_v8  ;;  %1304 = vmatpush1.bf16.msra.mxu0 %v2134_v21  ;;  %v2193_v21 = vld [vmem:[#allocation5 + $0xa4] ss:$24 sps:$4 sm:$0xff]  }
  0xff   : > { %1345 = vmatpush1.bf16.msra.mxu1 %v2137_v23  ;;  %1305 = vmatprep.subr.bf16.mxu0 %v2142_v25  ;;  %v2196_v23 = vld [vmem:[#allocation5 + $0xd4] ss:$24 sps:$4 sm:$0xff]   ;;  %v2199_v25 = vld [vmem:[#allocation5 + $0x104] ss:$24 sps:$4 sm:$0xff]  }
 0x100   : > { %1346 = vmatprep.subr.bf16.mxu1 %v2145_v26  ;;  %v2197_v26 = vld [vmem:[#allocation5 + $0x100] ss:$24 sps:$4 sm:$0xff]  }
 0x102   : > { %1306 = vmatpush1.bf16.msra.mxu0 %v2140_v27  ;;  %v2202_v27 = vld [vmem:[#allocation5 + $0x134] ss:$24 sps:$4 sm:$0xff]  }
 0x103   : > { %1347 = vmatpush1.bf16.msra.mxu1 %v2143_v28  ;;  %1307 = vmatprep.subr.bf16.mxu0 %v2148_v29  ;;  %v2205_v28 = vld [vmem:[#allocation5 + $0x164] ss:$24 sps:$4 sm:$0xff]   ;;  %v2203_v29 = vld [vmem:[#allocation5 + $0x160] ss:$24 sps:$4 sm:$0xff]  }
 0x104   : > { %1348 = vmatprep.subr.bf16.mxu1 %v2151_v30  ;;  %v1034_v30 = vshrl.u32 %v252_v43, 7 }
 0x106   : > { %1308 = vmatpush1.bf16.msra.mxu0 %v2146_v31  ;;  %v1035_v31 = vsub.s32 0, %v1034_v30 }
 0x107   : > { %1349 = vmatpush1.bf16.msra.mxu1 %v2149_v32  ;;  %1309 = vmatprep.subr.bf16.mxu0 %v2154_v33  ;;  %v1031_v32 = vld [vmem:[%s2632_s4] sm:$0x3f]  ;;  %v1039_v33 = vsub.s32 1, %v1034_v30 }
 0x108   : > { %1350 = vmatprep.subr.bf16.mxu1 %v2157_v34  ;;  %v1036_v34 = vrot.slane %v1031_v32, %v1035_v31 }
 0x10a   : > { %1310 = vmatpush1.bf16.msra.mxu0 %v2152_v35  ;;  %v1040_v35 = vrot.slane %v1031_v32, %v1039_v33 }
 0x10b   : > { %1351 = vmatpush1.bf16.msra.mxu1 %v2155_v36  ;;  %1311 = vmatprep.subr.bf16.mxu0 %v2160_v37 }
 0x10c   : > { %1352 = vmatprep.subr.bf16.mxu1 %v2163_v38 }
 0x10e   : > { %1312 = vmatpush1.bf16.msra.mxu0 %v2158_v39 }
 0x10f   : > { %1353 = vmatpush1.bf16.msra.mxu1 %v2161_v40  ;;  %1313 = vmatprep.subr.bf16.mxu0 %v2166_v41 }
 0x110   : > { %1354 = vmatprep.subr.bf16.mxu1 %v2169_v42 }
 0x112   : > { %1314 = vmatpush1.bf16.msra.mxu0 %v2164_v44 }
 0x113   : > { %1355 = vmatpush1.bf16.msra.mxu1 %v2167_v45  ;;  %1315 = vmatprep.subr.bf16.mxu0 %v2172_v46 }
 0x114   : > { %1356 = vmatprep.subr.bf16.mxu1 %v2175_v48 }
 0x116   : > { %1316 = vmatpush1.bf16.msra.mxu0 %v2170_v47 }
 0x117   : > { %1357 = vmatpush1.bf16.msra.mxu1 %v2173_v49  ;;  %1317 = vmatprep.subr.bf16.mxu0 %v2178_v50  ;;  %v1051_v49 = vsub.s32 4, %v1034_v30  ;;  %v1055_v50 = vsub.s32 5, %v1034_v30 }
 0x118   : > { %1358 = vmatprep.subr.bf16.mxu1 %v2181_v52 }
 0x119   : > { %v1052_v52 = vrot.slane %v1031_v32, %v1051_v49 }
 0x11a   : > { %1318 = vmatpush1.bf16.msra.mxu0 %v2176_v51  ;;  %v1047_v51 = vsub.s32 3, %v1034_v30 }
 0x11b   : > { %1359 = vmatpush1.bf16.msra.mxu1 %v2179_v53  ;;  %1385 = vmatprep.subr.bf16.mxu0 %v2184_v54  ;;  %v1056_v53 = vrot.slane %v1031_v32, %v1055_v50 }
 0x11c   : > { %v1048_v54 = vrot.slane %v1031_v32, %v1047_v51 }
 0x1af   : > { %v1900_v55 = vpop.f32.mrb[0].mxu1 }
 0x1b0   : > { %v1878_v56 = vpop.f32.mrb[0].mxu0  ;;  %v1901_v57 = vpop.f32.mrb[1].mxu1 }
 0x1b1   : > { %v1879_v58 = vpop.f32.mrb[1].mxu0  ;;  %v1902_v59 = vadd.f32 %v1901_v57, %v1900_v55  ;;  %v1903_v60 = vpop.f32.mrb[2].mxu1 }
 0x1b2   : > { %v1880_v61 = vadd.f32 %v1879_v58, %v1878_v56  ;;  %v1881_v62 = vpop.f32.mrb[2].mxu0  ;;  %v1904_v63 = vpop.f32.mrb[3].mxu1 }
 0x1b3   : > { %v1882_v0 = vpop.f32.mrb[3].mxu0 }
 0x1b4   : > { %v897_v1 = vadd.f32 %v1902_v59, %v1880_v61 }
 0x1cf   : > { %v1944_v2 = vpop.f32.mrb[4].mxu1 }
 0x1d0   : > { %v1922_v3 = vpop.f32.mrb[4].mxu0  ;;  %v1945_v4 = vpop.f32.mrb[5].mxu1 }
 0x1d1   : > { %v1923_v5 = vpop.f32.mrb[5].mxu0  ;;  %v1946_v6 = vadd.f32 %v1945_v4, %v1944_v2  ;;  %v1947_v7 = vpop.f32.mrb[6].mxu1 }
 0x1d2   : > { %v1924_v9 = vadd.f32 %v1923_v5, %v1922_v3  ;;  %v1925_v10 = vpop.f32.mrb[6].mxu0  ;;  %v1948_v11 = vpop.f32.mrb[7].mxu1  ;;  %v1043_v7 = vsub.s32 2, %v1034_v30 }
 0x1d3   : > { %v1926_v12 = vpop.f32.mrb[7].mxu0 }
 0x1d4   : > { %v937_v13 = vadd.f32 %v1924_v9, %v897_v1  ;;  %v1044_v9 = vrot.slane %v1031_v32, %v1043_v7 }
 0x1d6   : > { %v977_v14 = vadd.f32 %v1946_v6, %v937_v13 }
 0x1d8   : > { %v982_v16 = vpack.c.bf16 %v977_v14, %v977_v14 }
 0x1da   : > { %1336 = vmatmul.mubr.bf16.vlgmr.msra.gmra.mrb[8].mxu0 %v982_v16  ;;  %1377 = vmatmul.mubr.bf16.vlgmr.msra.gmra.mrb[8].mxu1 %v982_v16 }
 0x1db   : > { %1386 = vmatpush1.bf16.msra.mxu0 %v2182_v15  ;;  %1417 = vmatprep.mubr.bf16.mxu0 %v2349_v8  ;;  %v2200_v8 = vld [vmem:[#allocation5 + $0x130] ss:$24 sps:$4 sm:$0xff]   ;;  %v2206_v15 = vld [vmem:[%s2631_s3] sm:$0xff]  }
 0x1dc   : > { %1387 = vmatprep.subr.bf16.mxu0 %v2187_v17  ;;  %v2207_v17 = vld [vmem:[%s2631_s3 + $0x8] sm:$0xff]  }
 0x1df   : > { %1388 = vmatpush1.bf16.msra.mxu0 %v2185_v18 }
 0x1e0   : > { %1389 = vmatprep.subr.bf16.mxu0 %v2190_v19 }
 0x1e3   : > { %1390 = vmatpush1.bf16.msra.mxu0 %v2188_v20  ;;  %v2208_v20 = vld [vmem:[%s2631_s3 + $0x10] sm:$0xff]  }
 0x1e4   : > { %1391 = vmatprep.subr.bf16.mxu0 %v2193_v21 }
 0x1e7   : > { %1392 = vmatpush1.bf16.msra.mxu0 %v2191_v22  ;;  %v2209_v22 = vld [vmem:[%s2631_s3 + $0x18] sm:$0xff]  }
 0x1e8   : > { %1393 = vmatprep.subr.bf16.mxu0 %v2196_v23  ;;  %v2210_v23 = vld [vmem:[%s2631_s3 + $0x20] sm:$0xff]  }
 0x1eb   : > { %1394 = vmatpush1.bf16.msra.mxu0 %v2194_v24  ;;  %v2211_v24 = vld [vmem:[%s2631_s3 + $0x28] sm:$0xff]  }
 0x1ec   : > { %1395 = vmatprep.subr.bf16.mxu0 %v2199_v25 }
 0x1ef   : > { %1396 = vmatpush1.bf16.msra.mxu0 %v2197_v26 }
 0x1f0   : > { %1397 = vmatprep.subr.bf16.mxu0 %v2202_v27 }
 0x1f3   : > { %1398 = vmatpush1.bf16.msra.mxu0 %v2200_v8 }
 0x1f4   : > { %1399 = vmatprep.subr.bf16.mxu0 %v2205_v28 }
 0x1f7   : > { %1400 = vmatpush1.bf16.msra.mxu0 %v2203_v29 }
 0x1fa   : > { %1418 = vmatmul.mubr.bf16.vlgmr.msra.gmra.mrb[12].mxu0 %v982_v16  ;;  %v2357_v16 = vmov 0.0  }
 0x1fb   : > { %1957 = vmatprep.subr.bf16.mxu1 %v2357_v16  ;;  %1969 = vmatprep.mubr.msk.bf16.mxu1 %vm2358_vm0, %v2357_v16 }
 0x1fc   : > { %1958 = vmatpush3.bf16.msra.mxu1 %v2206_v15 }
 0x1fd   : > { %1959 = vmatprep.subr.bf16.mxu1 %v2357_v16 }
 0x200   : > { %1960 = vmatpush3.bf16.msra.mxu1 %v2207_v17 }
 0x201   : > { %1961 = vmatprep.subr.bf16.mxu1 %v2357_v16 }
 0x204   : > { %1962 = vmatpush3.bf16.msra.mxu1 %v2208_v20 }
 0x205   : > { %1963 = vmatprep.subr.bf16.mxu1 %v2357_v16 }
 0x208   : > { %1964 = vmatpush3.bf16.msra.mxu1 %v2209_v22 }
 0x209   : > { %1965 = vmatprep.subr.bf16.mxu1 %v2357_v16 }
 0x20c   : > { %1966 = vmatpush3.bf16.msra.mxu1 %v2210_v23 }
 0x20d   : > { %1967 = vmatprep.subr.bf16.mxu1 %v2357_v16 }
 0x210   : > { %1968 = vmatpush3.bf16.msra.mxu1 %v2211_v24 }
 0x2ad   : > { %v1337_v36 = vpop.f32.mrb[8].mxu0  ;;  %v1378_v37 = vpop.f32.mrb[8].mxu1 }
 0x2ae   : > { %v1338_v38 = vadd.f32 %v1337_v36, %v1036_v34  ;;  %v1339_v39 = vpop.f32.mrb[9].mxu0  ;;  %v1380_v40 = vpop.f32.mrb[9].mxu1  ;;  %v1379_v13 = vadd.f32 %v1378_v37, %v1044_v9 }
 0x2af   : > { %v1340_v41 = vadd.f32 %v1339_v39, %v1040_v35  ;;  %v1341_v42 = vpop.f32.mrb[10].mxu0  ;;  %v1382_v44 = vpop.f32.mrb[10].mxu1  ;;  %v1381_v62 = vadd.f32 %v1380_v40, %v1048_v54 }
 0x2b0   : > { %v1426_v45 = vmax.f32 %v1338_v38, 0.0  ;;  %v1342_v46 = vpop.f32.mrb[11].mxu0  ;;  %v1383_v47 = vpop.f32.mrb[11].mxu1  ;;  %v1428_v18 = vmax.f32 %v1379_v13, 0.0 }
 0x2b1   : > { %v1427_v43 = vmax.f32 %v1340_v41, 0.0  ;;  %v2546_v0 = vmax.f32 %v1381_v62, 0.0 }
 0x2b3   : > { %v2059_v48 = vpack.i.bf16 %v1427_v43, %v1426_v45 }
 0x2b5   : > { %2060 = vrot.lane.b32.xlu1 %v2059_v48, %s2355_s14 }
 0x2cd   : > { %v1419_v55 = vpop.f32.mrb[12].mxu0 }
 0x2ce   : > { %v1420_v56 = vadd.f32 %v1419_v55, %v1052_v52  ;;  %v1421_v57 = vpop.f32.mrb[13].mxu0  ;;  %v1850_v52 = vld [vmem:[%s2632_s4 + $0x6] ss:$0 sm:$0xff] }
 0x2cf   : > { %v1422_v58 = vadd.f32 %v1421_v57, %v1056_v53  ;;  %v1423_v59 = vpop.f32.mrb[14].mxu0 }
 0x2d0   : > { %v1430_v60 = vmax.f32 %v1420_v56, 0.0  ;;  %v1424_v61 = vpop.f32.mrb[15].mxu0 }
 0x2d1   : > { %v1431_v63 = vmax.f32 %v1422_v58, 0.0 }
 0x2d2   : > { %1466 = vrot.lane.b32.xlu1 %v1430_v60, %s2355_s14 }
 0x2d3   : > { %1484 = vrot.lane.b32.xlu0 %v1431_v63, %s2355_s14 }
 0x2d6   : > { %1494 = vrot.lane.b32.xlu1 %v1431_v63, %s2356_s15 }
 0x2d7   : > { %1460 = vrot.lane.b32.xlu0 %v2546_v0, %s2355_s14 }
 0x327   : > { %v2061_v1 = vpop.permute.xlu1 %2060 }
 0x328   : > { %v2063_v2 = vunpack.i.h.bf16 %v2061_v1  ;;  %v2062_v3 = vunpack.i.l.bf16 %v2061_v1 }
 0x32a   : > { %v1441_v4 = vmax.f32 %v1427_v43, %v2063_v2  ;;  %v1436_v5 = vmax.f32 %v1426_v45, %v2062_v3 }
 0x32c   : > { %v2064_v6 = vpack.i.bf16 %v1441_v4, %v1436_v5 }
 0x32e   : > { %2065 = vrot.lane.b32.xlu1 %v2064_v6, %s2356_s15 }
 0x344   : > { %v1467_v10 = vpop.permute.xlu1 %1466 }
 0x345   : > { %v1469_v11 = vadd.f32 %v1467_v10, %v2546_v0  ;;  %v1485_v12 = vpop.permute.xlu0 %1484  ;;  %v1482_v27 = vadd.f32 %v1467_v10, %v1430_v60 }
 0x346   : > { %v1487_v14 = vadd.f32 %v1485_v12, %v1430_v60  ;;  %v1488_v25 = vadd.f32 %v1485_v12, %v1431_v63 }
 0x347   : > { %1476 = vrot.lane.b32.xlu1 %v1469_v11, %s2356_s15 }
 0x348   : > { %1490 = vrot.lane.b32.xlu0 %v1487_v14, %s2356_s15  ;;  %v1495_v26 = vpop.permute.xlu1 %1494 }
 0x349   : > { %v1461_v19 = vpop.permute.xlu0 %1460  ;;  %v1497_v28 = vadd.f32 %v1495_v26, %v1488_v25 }
 0x34a   : > { %v1463_v21 = vadd.f32 %v1461_v19, %v1428_v18  ;;  %v1464_v39 = vadd.f32 %v1461_v19, %v2546_v0 }
 0x34c   : > { %1455 = vrot.lane.b32.xlu0 %v1428_v18, %s2355_s14  ;;  %s1712_s14 = sshll.u32 %s243_s13, 3 }
 0x34d   : > { %s245_s7 = scalar_lea.vmem [#allocation7], %s1712_s14 }
 0x34e   : > { %s1623_s23 = sshll.u32 %s245_s7, 4  ;;  %s2587_s23 = int_to_ptr.vmem [resolvable:$true] %s1623_s23 }
 0x34f   : > { %s2268_s30 = scalar_lea.vmem %s2587_s23, 128  ;;  %p2275_p4 = scmp.lt.s32.totalorder %s2587_s23, %s2273_s10 }
 0x350   : > { %1471 = vrot.lane.b32.xlu0 %v1463_v21, %s2356_s15  ;;  %p2269_p12 = scmp.ne.s32.totalorder %s2587_s23, %s2268_s30  ;;  %p2276_p7 = scmp.lt.s32.totalorder %s2274_s9, %s2268_s30 }
 0x352   : > { %p2270_p2 = pnand %p2269_p12, %p2646_p1  ;;  %p2277_p8 = por %p2276_p7, %p2275_p4 }
 0x354   : > { %p2271_p3 = pneg %p2270_p2 }
 0x356   : > { %p2278_p11 = pnand %p2277_p8, %p2271_p3 }
 0x3a0   : > { %v2066_v33 = vpop.permute.xlu1 %2065 }
 0x3a1   : > { %v2068_v35 = vunpack.i.h.bf16 %v2066_v33  ;;  %v2067_v36 = vunpack.i.l.bf16 %v2066_v33 }
 0x3a3   : > { %v1451_v41 = vmax.f32 %v1441_v4, %v2068_v35  ;;  %v1446_v42 = vmax.f32 %v1436_v5, %v2067_v36 }
 0x3a5   : > { %v1452_v46 = vmax.f32 %v1446_v42, %v1451_v41 }
 0x3a7   : > { %v1453_v43 = vmax.f32 %v1452_v46, %v1428_v18 }
 0x3b9   : > { %v1477_v38 = vpop.permute.xlu1 %1476 }
 0x3ba   : > { %v1491_v8 = vpop.permute.xlu0 %1490  ;;  %v1479_v44 = vadd.f32 %v1477_v38, %v1464_v39 }
 0x3bb   : > { %v1493_v29 = vadd.f32 %v1491_v8, %v1482_v27 }
 0x3bd   : > { %v1498_v30 = vadd.f32 %v1497_v28, %v1493_v29 }
 0x3be   : > { %v1456_v32 = vpop.permute.xlu0 %1455 }
 0x3bf   : > { %v1499_v31 = vmul.f32 0.14285715, %v1498_v30  ;;  %v1458_v37 = vadd.f32 %v1456_v32, %v1428_v18 }
 0x3c1   : > { %1501 = vrot.lane.b32.xlu0 %v1499_v31, %s2359_s12 }
 0x3c2   : > { %v1472_v34 = vpop.permute.xlu0 %1471 }
 0x3c3   : > { %v1474_v40 = vadd.f32 %v1472_v34, %v1458_v37 }
 0x3c5   : > { %v1480_v45 = vadd.f32 %v1479_v44, %v1474_v40 }
 0x3c7   : > { %v1481_v47 = vmul.f32 0.125, %v1480_v45 }
 0x3c9   : > { %v1505_v49 = vsel %vm1504_vm1, %v1453_v43, %v1481_v47 }
 0x433   : > { %v1502_v48 = vpop.permute.xlu0 %1501 }
 0x434   : > { %v1507_v50 = vsel %vm1506_vm2, %v1505_v49, %v1502_v48 }
 0x435   : > { %v1508_v51 = vpack.c.bf16 %v1507_v50, %v1507_v50 }
 0x437   : > { %1970 = vmatmul.mubr.msk.bf16.vlgmr.msra.gmra.mrb[12].mxu1 %vm1564_vm3, %v1508_v51 }
 0x50a   : > { %v1602_v53 = vpop.f32.mrb[12].mxu1 }
 0x50b   : > { %v1603_v54 = vadd.f32 %v1850_v52, %v1602_v53  ;;  %v1971_v55 = vpop.f32.mrb[13].mxu1 }
 0x50c   : > { %v1605_v56 = vpop.f32.mrb[14].mxu1 }
 0x50d   : > { %v1972_v57 = vpop.f32.mrb[15].mxu1  ;;  %1608 = vst.msk [vmem:[%s245_s7] sm:$0xff] %vm1504_vm1, %v1603_v54 }
 0x50e   : > { %2281 = shalt.err (!%p2278_p11)
}
 0x50f   : > { %s2282_s11 = scalar_lea.hbm %s2585_s6, 128  ;;  %s2286_s14 = scalar_lea.hbm %s2633_s5, 256 }
 0x510   : > { %p2283_p13 = scmp.ne.s32.totalorder %s2585_s6, %s2282_s11  ;;  %p2287_p6 = scmp.lt.u32.totalorder %s2585_s6, %s2633_s5 }
 0x511   : > { %p2288_p9 = scmp.lt.u32.totalorder %s2286_s14, %s2282_s11  ;;  %p2290_p12 = scmp.lt.u32.totalorder %s2282_s11, %s2585_s6 }
 0x512   : > { %p2284_p0 = pnand %p2283_p13, %p2646_p1 }
 0x513   : > { %p2289_p10 = por %p2288_p9, %p2287_p6 }
 0x514   : > { %p2285_p5 = pneg %p2284_p0 }
 0x515   : > { %p2291_p2 = por %p2290_p12, %p2289_p10 }
 0x517   : > { %p2292_p3 = pnand %p2291_p2, %p2285_p5 }
 0x519   : > { %2295 = shalt.err (!%p2292_p3)
}
 0x51a   : > { %1981 = dma.vmem_to_hbm [thread:$0]  (%p2646_p1), %s2587_s23, 128, %s2585_s6, %s1610_s22  }
 0x51b PF: > { %p1998_p4 = scmp.ge.s32.totalorder %s2338_s21, 2  ;;  %s1635_s17 = sand.u32 1, %s2326_s18  }
 0x51c   : > { %p2647_p7 = scmp.ne.s32.totalorder %s2638_s29, 0  ;;  %s1636_s7 = scalar_lea.sflag [#allocation4], %s1635_s17 }
 0x51e   : > { %p1991_p8 = pnand %p1998_p4, %p2647_p7 }
 0x520   : > { %2321 = dma.done.wait (!%p1991_p8), %s1636_s7, 128  }
 0x521   : > { %2323 = vsyncadd (!%p1991_p8), %s1636_s7, 4294967168  ;;  %p17_p11 = scmp.ge.s32.totalorder %s2416_s24, 4   ;;  %s2648_s18 = smov %s2330_s19 }
 0x522   : > { %s2649_s19 = smov %s2334_s20  ;;  %s2650_s20 = smov %s2427_s27 }
 0x523   : > { %s2651_s21 = smov %s2416_s24  ;;  %19 = sbr.rel (!%p17_p11) target bundleno = 5 (0x5), region = 84 }
 0x52a   :  { %1641 = vsyncpa [#allocation3], 1 }
 0x52b   :  { %1643 = vsyncpa [#allocation3 + $0x1], 1 }
 0x52c   :  { %1644 = vsyncpa [#allocation6], 1 }
 0x52d   :  { %1645 = vsyncpa [#allocation4], 1 }
 0x52e   :  { %1647 = vsyncpa [#allocation4 + $0x1], 1 }

</bundles_post_ra>
